<compile_context>
chip_gen: v7x
topology: tpu7x:2x2x1
jax: 0.10.0
libtpu: 0.0.40
codegen_flags: <defaults>
</compile_context>

<pallas_src>
import jax
import jax.numpy as jnp
import numpy as np
from jax.experimental import pallas as pl
from jax.experimental.pallas import tpu as pltpu

# Parameter layout fixed by the PyTorch module (param[:, 12:211], param[:, 211:]).
K_SHP = 199
K_EXP = 29
K = K_SHP + K_EXP            # 228
KP1 = K + 1                  # alphas augmented with a constant-1 column (carries u)
KF = 3 * KP1 + 1             # + one all-ones row carrying the offset delta -> 688
PARAM_DIM = 12 + K           # 240


def _round_up(a, b):
    return ((a + b - 1) // b) * b


def _vdc_kernel(g_ref, w_ref, out_ref):
    """One V-tile: diff = G @ W_tile, then per-lane partial sums of diff**2.

    g_ref   : (M, KF)        coefficient deltas (rows = (n, i), zero-padded)
    w_ref   : (KF, V_TILE)   component-major basis tile (V on lanes)
    out_ref : (1, 1, V_TILE) per-lane partial sums for this tile
    """
    diff = jnp.dot(g_ref[...], w_ref[...], preferred_element_type=jnp.float32)
    out_ref[0] = jnp.sum(diff * diff, axis=0, keepdims=True)


def prepare_basis(u, w_shp, w_exp, *, v_tile=256, dtype=jnp.float32):
    """One-time layout plumbing on the constant BFM basis (hoisted out of the loss).

    Returns (w_flat, num_vertices) with
      w_flat[j*(K+1)+k, v] = W[3v+j, k]   where W = [w_shp | w_exp | u]
      w_flat[3*(K+1),   v] = 1.0
    and the lane (V) axis zero-padded to a multiple of v_tile.
    """
    three_v = u.shape[0]
    num_v = three_v // 3
    wu = jnp.concatenate(
        [w_shp, w_exp, u.reshape(three_v, 1)], axis=1).astype(jnp.float32)  # (3V, K+1)
    # interleaved rows (x0,y0,z0,x1,...) -> (3, K+1, V): component-major, V on lanes
    wf = wu.reshape(num_v, 3, KP1).transpose(1, 2, 0).reshape(3 * KP1, num_v)
    w_flat = jnp.concatenate([wf, jnp.ones((1, num_v), jnp.float32)], axis=0)  # (KF, V)
    v_pad = _round_up(num_v, v_tile)
    if v_pad != num_v:
        # zero-padded lanes (incl. the ones-row) contribute exactly 0 to the loss
        w_flat = jnp.pad(w_flat, ((0, 0), (0, v_pad - num_v)))
    return w_flat.astype(dtype), num_v


def vdc_loss(x, target, w_flat, param_mean, param_std, *, num_vertices, v_tile=256):
    """Pallas-backed equivalent of VDCLoss.forward_all."""
    n = x.shape[0]
    param = x * param_std + param_mean
    param_gt = target * param_std + param_mean

    def parse(prm):  # _parse_param_batch
        p_ = prm[:, :12].reshape(n, 3, 4)
        return p_[:, :, :3], p_[:, :, 3], prm[:, 12:12 + K_SHP], prm[:, 12 + K_SHP:]

    p, off, a_s, a_e = parse(param)
    pg, offg, a_sg, a_eg = parse(param_gt)
    off = off.at[:, 2].set(offg[:, 2])            # offset[:, -1] = offsetg[:, -1]

    ones = jnp.ones((n, 1), param.dtype)
    alpha = jnp.concatenate([a_s, a_e, ones], axis=1)       # (N, K+1); the 1 carries u
    alphag = jnp.concatenate([a_sg, a_eg, ones], axis=1)

    # Coefficient deltas: dg[n, i, j*(K+1)+k] = pg[n,i,j]*ag[n,k] - p[n,i,j]*a[n,k]
    dg = (jnp.einsum('nij,nk->nijk', pg, alphag)
          - jnp.einsum('nij,nk->nijk', p, alpha)).reshape(n, 3, 3 * KP1)
    doff = (offg - off)[..., None]                           # (N, 3, 1)
    g = jnp.concatenate([dg, doff], axis=-1).reshape(n * 3, KF)
    g = g.astype(w_flat.dtype)

    m_pad = _round_up(n * 3, 8)                              # zero rows contribute 0
    if m_pad != n * 3:
        g = jnp.pad(g, ((0, m_pad - n * 3), (0, 0)))

    v_pad = w_flat.shape[1]
    num_tiles = v_pad // v_tile

    partials = pl.pallas_call(
        _vdc_kernel,
        out_shape=jax.ShapeDtypeStruct((num_tiles, 1, v_tile), jnp.float32),
        grid=(num_tiles,),
        in_specs=[
            pl.BlockSpec((m_pad, KF), lambda t: (0, 0)),     # tiny, stays resident
            pl.BlockSpec((KF, v_tile), lambda t: (0, t)),    # streams W exactly once
        ],
        out_specs=pl.BlockSpec((1, 1, v_tile), lambda t: (t, 0, 0)),
        compiler_params=pltpu.CompilerParams(
            dimension_semantics=("parallel",)),              # per-tile partials -> no race
    )(g, w_flat)

    return jnp.sum(partials) / jnp.float32(n * 3 * num_vertices)


def vdc_loss_ref(x, target, u, w_shp, w_exp, param_mean, param_std):
    """Pure-JAX reference mirroring the PyTorch forward exactly."""
    n = x.shape[0]
    v = u.shape[0] // 3
    param = x * param_std + param_mean
    param_gt = target * param_std + param_mean

    def parse(prm):
        p_ = prm[:, :12].reshape(n, 3, 4)
        return (p_[:, :, :3], p_[:, :, 3:4],
                prm[:, 12:12 + K_SHP, None], prm[:, 12 + K_SHP:, None])

    p, off, a_s, a_e = parse(param)
    pg, offg, a_sg, a_eg = parse(param_gt)
    off = off.at[:, 2].set(offg[:, 2])

    def recon(pm, offm, a_shp, a_exp):
        s = u[None] + jnp.matmul(w_shp[None], a_shp) + jnp.matmul(w_exp[None], a_exp)
        s = s.reshape(n, v, 3).transpose(0, 2, 1)     # (N, 3, V)
        return jnp.matmul(pm, s) + offm

    gt_v = recon(pg, offg, a_sg, a_eg)
    vtx = recon(p, off, a_s, a_e)
    return jnp.mean((gt_v - vtx) ** 2)


if __name__ == "__main__":
    key = jax.random.PRNGKey(0)
    kx, kt, ku, ks, ke, km, kd = jax.random.split(key, 7)
    N = 2
    V = 1000          # deliberately not a multiple of 128 (real BFM V=53215)
    V_TILE = 256

    x = jax.random.normal(kx, (N, PARAM_DIM), jnp.float32)
    target = jax.random.normal(kt, (N, PARAM_DIM), jnp.float32)

    # Deterministic stand-ins for BFM.mat / gt_mean.txt / gt_std.txt
    u = jax.random.normal(ku, (3 * V, 1), jnp.float32)
    w_shp = jax.random.normal(ks, (3 * V, K_SHP), jnp.float32) * 0.1
    w_exp = jax.random.normal(ke, (3 * V, K_EXP), jnp.float32) * 0.1
    param_mean = jax.random.normal(km, (PARAM_DIM,), jnp.float32) * 0.1
    param_std = jax.random.uniform(kd, (PARAM_DIM,), jnp.float32,
                                   minval=0.5, maxval=1.5)

    # One-time (model-load) basis preparation; use dtype=jnp.bfloat16 for real BFM.
    w_flat, num_v = prepare_basis(u, w_shp, w_exp, v_tile=V_TILE)

    loss_fn = jax.jit(vdc_loss, static_argnames=("num_vertices", "v_tile"))
    loss = loss_fn(x, target, w_flat, param_mean, param_std,
                   num_vertices=num_v, v_tile=V_TILE)
    loss = jax.block_until_ready(loss)

    ref = vdc_loss_ref(x, target, u, w_shp, w_exp, param_mean, param_std)
    np.testing.assert_allclose(np.array(loss), np.array(ref), rtol=1e-3, atol=1e-5)

    print("KERNEL_OK")
</pallas_src>

<mosaic_0001>
module attributes {stable_mosaic.version = 11 : i64} {
  func.func @_vdc_kernel(%arg0: i32, %arg1: memref<8x688xf32, #tpu.memory_space<vmem>>, %arg2: memref<688x256xf32, #tpu.memory_space<vmem>>, %arg3: memref<1x1x256xf32, #tpu.memory_space<vmem>>) attributes {dimension_semantics = [#tpu.dimension_semantics<parallel>], iteration_bounds = array<i64: 4>, scalar_prefetch = 0 : i64, scratch_operands = 0 : i64, tpu.core_type = #tpu.core_type<tc>, window_params = [{pipeline_mode = #tpu.pipeline_mode<synchronous>, transform_indices = @transform_0, window_bounds = array<i64: 8, 688>}, {transform_indices = @transform_1, window_bounds = array<i64: 688, 256>}, {transform_indices = @transform_2, window_bounds = array<i64: 1, 1, 256>}]} {
    %c0 = arith.constant 0 : index
    %c0_0 = arith.constant 0 : index
    %0 = vector.load %arg1[%c0, %c0_0] : memref<8x688xf32, #tpu.memory_space<vmem>>, vector<8x688xf32>
    %c0_1 = arith.constant 0 : index
    %c0_2 = arith.constant 0 : index
    %1 = vector.load %arg2[%c0_1, %c0_2] : memref<688x256xf32, #tpu.memory_space<vmem>>, vector<688x256xf32>
    %cst = arith.constant dense<0.000000e+00> : vector<8x256xf32>
    %2 = tpu.matmul %0, %1, %cst {dimension_numbers = #tpu.dot_dimension_numbers<[1], [0], [0], [1], [0, 0, 1, 1], [], []>} : vector<8x688xf32>, vector<688x256xf32>, vector<8x256xf32> -> vector<8x256xf32>
    %3 = arith.mulf %2, %2 : vector<8x256xf32>
    %cst_3 = arith.constant dense<0.000000e+00> : vector<256xf32>
    %4 = vector.multi_reduction <add>, %3, %cst_3 [0] : vector<8x256xf32> to vector<256xf32>
    %5 = vector.shape_cast %4 : vector<256xf32> to vector<1x256xf32>
    %c0_4 = arith.constant 0 : index
    %c0_5 = arith.constant 0 : index
    %c0_6 = arith.constant 0 : index
    %6 = vector.load %arg3[%c0_4, %c0_5, %c0_6] : memref<1x1x256xf32, #tpu.memory_space<vmem>>, vector<1x1x256xf32>
    %7 = vector.shape_cast %6 : vector<1x1x256xf32> to vector<1x256xf32>
    %8 = vector.shape_cast %5 : vector<1x256xf32> to vector<1x1x256xf32>
    tpu.vector_store %arg3[%c0_4, %c0_5, %c0_6], %8 {strides = array<i32>} : memref<1x1x256xf32, #tpu.memory_space<vmem>>, vector<1x1x256xf32>,
    return
  }
  func.func @transform_0(%arg0: i32) -> (i32, i32) {
    %c0_i32 = arith.constant 0 : i32
    %c0_i32_0 = arith.constant 0 : i32
    %c0_i32_1 = arith.constant 0 : i32
    return %c0_i32, %c0_i32_0 : i32, i32
  }
  func.func @transform_1(%arg0: i32) -> (i32, i32) {
    %c0_i32 = arith.constant 0 : i32
    %c0_i32_0 = arith.constant 0 : i32
    return %c0_i32, %arg0 : i32, i32
  }
  func.func @transform_2(%arg0: i32) -> (i32, i32, i32) {
    %c0_i32 = arith.constant 0 : i32
    %c0_i32_0 = arith.constant 0 : i32
    %c0_i32_1 = arith.constant 0 : i32
    return %arg0, %c0_i32, %c0_i32_0 : i32, i32, i32
  }
}

</mosaic_0001>

<bundles_post_ra>
// kernel: sub.3
= control target key start
LH: loop header
LB: loop body
LE: loop exit
PB: predicated region body
PF: predicated region fallthrough
CT: control target
= control target key end

     0   :  { %s34_s0 = inlined_call_operand.vmem [shape: f32[2,3], index: 0, kind: input, shape index: {}]   ;;  %s35_s1 = inlined_call_operand.vmem [shape: f32[2,3], index: 1, kind: input, shape index: {}]   ;;  %s36_s2 = inlined_call_operand.vmem [shape: f32[2,3], index: 2, kind: output, shape index: {}]  }
   0x1   :  { %v3_v0 = vld [vmem:[%s34_s0] sm:$0x3] }
   0x2   :  { %v4_v1 = vld [vmem:[%s35_s1] sm:$0x3] }
   0x3   :  { %v7_v2 = vsub.f32 %v3_v0, %v4_v1 }
   0x5   :  { %9 = vst [vmem:[%s36_s2] sm:$0x3] %v7_v2 }

// kernel: vdc_loss.1
= control target key start
LH: loop header
LB: loop body
LE: loop exit
PB: predicated region body
PF: predicated region fallthrough
CT: control target
= control target key end

     0   :  { %7 = vsyncpa [#allocation3], 0  ;;  %s1277_s0 = inlined_call_operand.vmem [shape: f32[8,688], index: 0, kind: input, shape index: {}]   ;;  %s1278_s1 = inlined_call_operand.hbm [shape: f32[688,1024], index: 1, kind: input, shape index: {}]   ;;  %s1279_s2 = inlined_call_operand.vmem [shape: f32[4,1,256], index: 2, kind: output, shape index: {}]  }
   0x1   :  { %9 = vsyncpa [#allocation3 + $0x1], 0  ;;  %s978_s9 = smov 0   ;;  %s980_s10 = smov 0  }
   0x2   :  { %s982_s11 = smov 0   ;;  %s984_s12 = smov 0  }
   0x3 LB: > { %s997_s13 = sadd.s32 4294967295, %s956_s12   ;;  %s1000_s14 = sadd.s32 1, %s956_s12   ;;  %s956_s12 = sphi %s984_s12, %s1285_s12   ;;  %s952_s11 = sphi %s982_s11, %s1284_s11   ;;  %s948_s10 = sphi %s980_s10, %s1283_s10   ;;  %s944_s9 = sphi %s978_s9, %s1282_s9  }
   0x4   : > { %s40_s15 = ssub.s32 %s956_s12, %s1000_s14  ;;  %s43_s16 = sadd.s32 1, %s952_s11 }
   0x5   : > { %p41_p0 = scmp.eq.s32.totalorder %s40_s15, 0  ;;  %p50_p1 = scmp.ne.s32.totalorder %s952_s11, %s948_s10 }
   0x6   : > { %p51_p2 = scmp.eq.s32.totalorder %s956_s12, 0  ;;  %p56_p3 = scmp.ne.s32.totalorder %s948_s10, %s944_s9 }
   0x7   : > { %s1010_s17 = scalar_select %p41_p0, %s952_s11, %s43_s16  }
   0x8   : > { %p52_p4 = por %p51_p2, %p50_p1  ;;  %p57_p5 = scmp.eq.s32.totalorder %s997_s13, 0 }
   0x9   : > { %p855_p6 = scmp.lt.s32.totalorder %s956_s12, 4  ;;  %s109_s19 = sand.u32 1, %s952_s11  }
   0xa   : > { %p1014_p7 = por %p57_p5, %p56_p3  ;;  %s847_s20 = smul.u32 1376, %s109_s19 }
   0xb   : > { %s670_s21 = sshll.u32 %s956_s12, 8  ;;  %p1020_p8 = pnand %p855_p6, %p52_p4 }
   0xc   : > { %s1027_s25 = scalar_lea.hbm %s1278_s1, %s670_s21  ;;  %s113_s26 = scalar_lea.vmem [#allocation2], %s847_s20 }
   0xd   : > { %s120_s27 = sshll.u32 %s113_s26, 4  ;;  %s1031_s28 = scalar_lea.sflag [#allocation3], %s109_s19  ;;  %s1029_s27 = int_to_ptr.vmem [resolvable:$true] %s120_s27 }
   0xe   : > { %s892_s29 = scalar_lea.hbm %s1027_s25, 22016  ;;  %p894_p10 = pneg %p1020_p8 }
   0xf   : > { %p893_p9 = scmp.ne.s32.totalorder %s1027_s25, %s892_s29  ;;  %s897_s4 = scalar_lea.hbm %s1278_s1, 88064 }
  0x10   : > { %p898_p13 = scmp.lt.u32.totalorder %s1027_s25, %s1278_s1  ;;  %p899_p0 = scmp.lt.u32.totalorder %s897_s4, %s892_s29 }
  0x11   : > { %p895_p11 = pnand %p894_p10, %p893_p9  ;;  %p901_p2 = scmp.lt.u32.totalorder %s892_s29, %s1027_s25 }
  0x12   : > { %p900_p1 = por %p899_p0, %p898_p13 }
  0x13   : > { %p896_p12 = pneg %p895_p11 }
  0x14   : > { %p902_p3 = por %p901_p2, %p900_p1 }
  0x16   : > { %p903_p4 = pnand %p902_p3, %p896_p12 }
  0x18   : > { %906 = shalt.err (!%p903_p4)
}
  0x19   : > { %s907_s7 = scalar_lea.vmem %s1029_s27, 22016  ;;  %s958_s8 = smov [#allocation2]  }
  0x1a   : > { %p908_p5 = scmp.ne.s32.totalorder %s1029_s27, %s907_s7  ;;  %s912_s9 = sshll.u32 %s958_s8, 4  ;;  %s913_s9 = int_to_ptr.vmem [resolvable:$false] %s912_s9 }
  0x1b   : > { %s914_s15 = scalar_lea.vmem %s913_s9, 44032  ;;  %p915_p11 = scmp.lt.s32.totalorder %s1029_s27, %s913_s9 }
  0x1c   : > { %p910_p6 = pnand %p908_p5, %p894_p10  ;;  %p916_p13 = scmp.lt.s32.totalorder %s914_s15, %s907_s7 }
  0x1e   : > { %p911_p9 = pneg %p910_p6  ;;  %p917_p0 = por %p916_p13, %p915_p11 }
  0x20   : > { %p918_p1 = pnand %p917_p0, %p911_p9 }
  0x22   : > { %921 = shalt.err (!%p918_p1)
}
  0x23   : > { %s959_s16 = smov 1024   ;;  %s960_s19 = smov 256  }
  0x24   : > { %s961_s20 = smov 16   ;;  %p665_p10 = scmp.ge.s32.totalorder %s956_s12, 1 }
  0x25   : > { %854 = dma.hbm_to_vmem [thread:$0]  (!%p1020_p8), %s1027_s25, 22016, %s1029_s27, %s1031_s28, %s959_s16, %s960_s19, %s961_s20  }
  0x26   : > { %p128_p12 = scmp.lt.s32.totalorder %s956_s12, 5 }
  0x28   : > { %p129_p2 = pnand %p665_p10, %p128_p12 }
  0x29   : > { %s134_s21 = sand.u32 (!%p129_p2), 1, %s948_s10  }
  0x2a   : > { %132 = sbr.rel (%p129_p2) target bundleno = 397 (0x18d), region = 28  ;;  %s135_s24 = scalar_lea.sflag (!%p129_p2), [#allocation3], %s134_s21 }
  0x2b   : > { %s848_s23 = smul.u32 (!%p129_p2), 1376, %s134_s21 }
  0x2d   : > { %s1062_s26 = scalar_lea.vmem (!%p129_p2), [#allocation2], %s848_s23 }
  0x31   : > { %939 = dma.done.wait (%p1014_p7), %s135_s24, 22016  }
  0x32   : > { %941 = vsyncadd (%p1014_p7), %s135_s24, 4294945280  ;;  %v234_v0 = vld [vmem:[%s1062_s26 + $0x208] sm:$0xff]  ;;  %v236_v1 = vld [vmem:[%s1062_s26 + $0x218] sm:$0xff]  ;;  %vm341_vm0 = vcmask 392192   ;;  %p159_p7 = scmp.lt.s32.totalorder %s997_s13, 3 }
  0x33   : > { %v233_v2 = vld [vmem:[%s1062_s26 + $0x200] sm:$0xff]  ;;  %v735_v3 = vpack.c.bf16 %v236_v1, %v234_v0  ;;  %v235_v4 = vld [vmem:[%s1062_s26 + $0x210] sm:$0xff]  ;;  %v238_v5 = vld [vmem:[%s1062_s26 + $0x228] sm:$0xff] }
  0x34   : > { %v240_v6 = vld [vmem:[%s1062_s26 + $0x238] sm:$0xff]  ;;  %v737_v7 = vpack.c.bf16 %v235_v4, %v233_v2  ;;  %v237_v9 = vld [vmem:[%s1062_s26 + $0x220] sm:$0xff]  ;;  %v239_v10 = vld [vmem:[%s1062_s26 + $0x230] sm:$0xff]  ;;  %s1287_s13 = smov (!%p159_p7, %s997_s13), 3 }
  0x35   : > { %v739_v8 = vpack.c.bf16 %v240_v6, %v238_v5  ;;  %v242_v11 = vld [vmem:[%s1062_s26 + $0x248] sm:$0xff]  ;;  %736 = vmatprep.subr.bf16.mxu0 %v735_v3  ;;  %v244_v12 = vld [vmem:[%s1062_s26 + $0x258] sm:$0xff]  ;;  %v741_v13 = vpack.c.bf16 %v239_v10, %v237_v9  ;;  %v241_v15 = vld [vmem:[%s1062_s26 + $0x240] sm:$0xff]  ;;  %s666_s7 = sshll.u32 %s1287_s13, 1 }
  0x36   : > { %738 = vmatpush1.bf16.msra.mxu0 %v737_v7  ;;  %v743_v14 = vpack.c.bf16 %v244_v12, %v242_v11  ;;  %v243_v16 = vld [vmem:[%s1062_s26 + $0x250] sm:$0xff]  ;;  %v246_v17 = vld [vmem:[%s1062_s26 + $0x268] sm:$0xff]  ;;  %v248_v18 = vld [vmem:[%s1062_s26 + $0x278] sm:$0xff]  ;;  %s162_s15 = scalar_lea.vmem %s1279_s2, %s666_s7 }
  0x37   : > { %740 = vmatprep.subr.bf16.mxu0 %v739_v8  ;;  %v745_v19 = vpack.c.bf16 %v243_v16, %v241_v15  ;;  %v747_v20 = vpack.c.bf16 %v248_v18, %v246_v17  ;;  %v245_v21 = vld [vmem:[%s1062_s26 + $0x260] sm:$0xff]  ;;  %v247_v22 = vld [vmem:[%s1062_s26 + $0x270] sm:$0xff]  ;;  %v250_v23 = vld [vmem:[%s1062_s26 + $0x288] sm:$0xff] }
  0x38   : > { %v252_v24 = vld [vmem:[%s1062_s26 + $0x298] sm:$0xff]  ;;  %v749_v25 = vpack.c.bf16 %v247_v22, %v245_v21  ;;  %v249_v27 = vld [vmem:[%s1062_s26 + $0x280] sm:$0xff]  ;;  %v251_v28 = vld [vmem:[%s1062_s26 + $0x290] sm:$0xff] }
  0x39   : > { %v751_v26 = vpack.c.bf16 %v252_v24, %v250_v23  ;;  %v254_v29 = vld [vmem:[%s1062_s26 + $0x2a8] sm:$0xff]  ;;  %v256_v30 = vld [vmem:[%s1062_s26 + $0x2b8] sm:$0xff]  ;;  %v169_v33 = vld [vmem:[%s1062_s26] sm:$0xff]  ;;  %v753_v35 = vpack.c.bf16 %v251_v28, %v249_v27 }
  0x3a   : > { %742 = vmatpush1.bf16.msra.mxu0 %v741_v13  ;;  %v170_v31 = vld [vmem:[%s1062_s26 + $0x8] sm:$0xff]  ;;  %v172_v32 = vld [vmem:[%s1062_s26 + $0x18] sm:$0xff]  ;;  %v171_v34 = vld [vmem:[%s1062_s26 + $0x10] sm:$0xff]  ;;  %v755_v40 = vpack.c.bf16 %v256_v30, %v254_v29 }
  0x3b   : > { %744 = vmatprep.subr.bf16.mxu0 %v743_v14  ;;  %v253_v36 = vld [vmem:[%s1062_s26 + $0x2a0] sm:$0xff]  ;;  %v255_v37 = vld [vmem:[%s1062_s26 + $0x2b0] sm:$0xff]  ;;  %v671_v38 = vpack.c.bf16 %v172_v32, %v170_v31  ;;  %v673_v39 = vpack.c.bf16 %v171_v34, %v169_v33  ;;  %v258_v41 = vld [vmem:[%s1062_s26 + $0x2c8] sm:$0xff] }
  0x3c   : > { %v174_v42 = vld [vmem:[%s1062_s26 + $0x28] sm:$0xff]  ;;  %v176_v43 = vld [vmem:[%s1062_s26 + $0x38] sm:$0xff]  ;;  %v173_v46 = vld [vmem:[%s1062_s26 + $0x20] sm:$0xff]  ;;  %v757_v49 = vpack.c.bf16 %v255_v37, %v253_v36 }
  0x3d   : > { %v260_v44 = vld [vmem:[%s1062_s26 + $0x2d8] sm:$0xff]  ;;  %672 = vmatprep.subr.bf16.mxu1 %v671_v38  ;;  %v675_v45 = vpack.c.bf16 %v176_v43, %v174_v42  ;;  %v175_v47 = vld [vmem:[%s1062_s26 + $0x30] sm:$0xff]  ;;  %v178_v50 = vld [vmem:[%s1062_s26 + $0x48] sm:$0xff] }
  0x3e   : > { %746 = vmatpush1.bf16.msra.mxu0 %v745_v19  ;;  %674 = vmatpush1.bf16.msra.mxu1 %v673_v39  ;;  %v677_v48 = vpack.c.bf16 %v175_v47, %v173_v46  ;;  %v180_v51 = vld [vmem:[%s1062_s26 + $0x58] sm:$0xff]  ;;  %v177_v52 = vld [vmem:[%s1062_s26 + $0x40] sm:$0xff]  ;;  %v759_v53 = vpack.c.bf16 %v260_v44, %v258_v41  ;;  %v259_v55 = vld [vmem:[%s1062_s26 + $0x2d0] sm:$0xff] }
  0x3f   : > { %748 = vmatprep.subr.bf16.mxu0 %v747_v20  ;;  %676 = vmatprep.subr.bf16.mxu1 %v675_v45  ;;  %v257_v54 = vld [vmem:[%s1062_s26 + $0x2c0] sm:$0xff]  ;;  %v679_v56 = vpack.c.bf16 %v180_v51, %v178_v50  ;;  %v179_v57 = vld [vmem:[%s1062_s26 + $0x50] sm:$0xff]  ;;  %v262_v58 = vld [vmem:[%s1062_s26 + $0x2e8] sm:$0xff] }
  0x40   : > { %v264_v59 = vld [vmem:[%s1062_s26 + $0x2f8] sm:$0xff]  ;;  %v182_v60 = vld [vmem:[%s1062_s26 + $0x68] sm:$0xff]  ;;  %v681_v61 = vpack.c.bf16 %v179_v57, %v177_v52  ;;  %v761_v63 = vpack.c.bf16 %v259_v55, %v257_v54  ;;  %v261_v0 = vld [vmem:[%s1062_s26 + $0x2e0] sm:$0xff] }
  0x41   : > { %v184_v62 = vld [vmem:[%s1062_s26 + $0x78] sm:$0xff]  ;;  %v181_v2 = vld [vmem:[%s1062_s26 + $0x60] sm:$0xff]  ;;  %v183_v3 = vld [vmem:[%s1062_s26 + $0x70] sm:$0xff]  ;;  %v763_v4 = vpack.c.bf16 %v264_v59, %v262_v58 }
  0x42   : > { %750 = vmatpush1.bf16.msra.mxu0 %v749_v25  ;;  %678 = vmatpush1.bf16.msra.mxu1 %v677_v48  ;;  %v683_v1 = vpack.c.bf16 %v184_v62, %v182_v60  ;;  %v263_v5 = vld [vmem:[%s1062_s26 + $0x2f0] sm:$0xff]  ;;  %v186_v6 = vld [vmem:[%s1062_s26 + $0x88] sm:$0xff]  ;;  %v188_v7 = vld [vmem:[%s1062_s26 + $0x98] sm:$0xff]  ;;  %v685_v11 = vpack.c.bf16 %v183_v3, %v181_v2 }
  0x43   : > { %752 = vmatprep.subr.bf16.mxu0 %v751_v26  ;;  %680 = vmatprep.subr.bf16.mxu1 %v679_v56  ;;  %v266_v8 = vld [vmem:[%s1062_s26 + $0x308] sm:$0xff]  ;;  %v268_v9 = vld [vmem:[%s1062_s26 + $0x318] sm:$0xff]  ;;  %v265_v10 = vld [vmem:[%s1062_s26 + $0x300] sm:$0xff]  ;;  %v765_v12 = vpack.c.bf16 %v263_v5, %v261_v0  ;;  %v687_v14 = vpack.c.bf16 %v188_v7, %v186_v6 }
  0x44   : > { %v267_v13 = vld [vmem:[%s1062_s26 + $0x310] sm:$0xff]  ;;  %v185_v15 = vld [vmem:[%s1062_s26 + $0x80] sm:$0xff]  ;;  %v767_v17 = vpack.c.bf16 %v268_v9, %v266_v8  ;;  %v190_v18 = vld [vmem:[%s1062_s26 + $0xa8] sm:$0xff] }
  0x45   : > { %v187_v16 = vld [vmem:[%s1062_s26 + $0x90] sm:$0xff]  ;;  %v192_v19 = vld [vmem:[%s1062_s26 + $0xb8] sm:$0xff]  ;;  %v270_v21 = vld [vmem:[%s1062_s26 + $0x328] sm:$0xff]  ;;  %v769_v24 = vpack.c.bf16 %v267_v13, %v265_v10 }
  0x46   : > { %754 = vmatpush1.bf16.msra.mxu0 %v753_v35  ;;  %682 = vmatpush1.bf16.msra.mxu1 %v681_v61  ;;  %v166_v20 = vld [vmem:[%s1277_s0 + $0x18] sm:$0xff]  ;;  %v689_v23 = vpack.c.bf16 %v187_v16, %v185_v15  ;;  %v269_v25 = vld [vmem:[%s1062_s26 + $0x320] sm:$0xff]  ;;  %v691_v26 = vpack.c.bf16 %v192_v19, %v190_v18  ;;  %v191_v28 = vld [vmem:[%s1062_s26 + $0xb0] sm:$0xff] }
  0x47   : > { %756 = vmatprep.subr.bf16.mxu0 %v755_v40  ;;  %684 = vmatprep.subr.bf16.mxu1 %v683_v1  ;;  %v272_v22 = vld [vmem:[%s1062_s26 + $0x338] sm:$0xff]  ;;  %v189_v27 = vld [vmem:[%s1062_s26 + $0xa0] sm:$0xff]  ;;  %v271_v30 = vld [vmem:[%s1062_s26 + $0x330] sm:$0xff] }
  0x48   : > { %480 = vmatprep.mubr.f32.mxu0 %v166_v20  ;;  %v771_v29 = vpack.c.bf16 %v272_v22, %v270_v21  ;;  %v194_v31 = vld [vmem:[%s1062_s26 + $0xc8] sm:$0xff]  ;;  %v196_v32 = vld [vmem:[%s1062_s26 + $0xd8] sm:$0xff]  ;;  %v693_v35 = vpack.c.bf16 %v191_v28, %v189_v27  ;;  %v773_v36 = vpack.c.bf16 %v271_v30, %v269_v25  ;;  %v273_v37 = vld [vmem:[%s1062_s26 + $0x340] sm:$0xff] }
  0x49   : > { %v274_v33 = vld [vmem:[%s1062_s26 + $0x348] sm:$0xff]  ;;  %v276_v34 = vld [vmem:[%s1062_s26 + $0x358] sm:$0xff]  ;;  %v695_v38 = vpack.c.bf16 %v196_v32, %v194_v31  ;;  %v193_v39 = vld [vmem:[%s1062_s26 + $0xc0] sm:$0xff] }
  0x4a   : > { %758 = vmatpush1.bf16.msra.mxu0 %v757_v49  ;;  %686 = vmatpush1.bf16.msra.mxu1 %v685_v11  ;;  %v195_v40 = vld [vmem:[%s1062_s26 + $0xd0] sm:$0xff]  ;;  %v775_v41 = vpack.c.bf16 %v276_v34, %v274_v33  ;;  %v198_v43 = vld [vmem:[%s1062_s26 + $0xe8] sm:$0xff]  ;;  %v200_v44 = vld [vmem:[%s1062_s26 + $0xf8] sm:$0xff] }
  0x4b   : > { %760 = vmatprep.subr.bf16.mxu0 %v759_v53  ;;  %688 = vmatprep.subr.bf16.mxu1 %v687_v14  ;;  %v275_v42 = vld [vmem:[%s1062_s26 + $0x350] sm:$0xff]  ;;  %v278_v45 = vld [vmem:[%s1062_s26 + $0x368] sm:$0xff]  ;;  %v280_v46 = vld [vmem:[%s1062_s26 + $0x378] sm:$0xff]  ;;  %v697_v47 = vpack.c.bf16 %v195_v40, %v193_v39  ;;  %v699_v50 = vpack.c.bf16 %v200_v44, %v198_v43 }
  0x4c   : > { %v777_v48 = vpack.c.bf16 %v275_v42, %v273_v37  ;;  %v277_v49 = vld [vmem:[%s1062_s26 + $0x360] sm:$0xff]  ;;  %v199_v52 = vld [vmem:[%s1062_s26 + $0xf0] sm:$0xff]  ;;  %v779_v53 = vpack.c.bf16 %v280_v46, %v278_v45  ;;  %v202_v55 = vld [vmem:[%s1062_s26 + $0x108] sm:$0xff] }
  0x4d   : > { %v197_v51 = vld [vmem:[%s1062_s26 + $0xe0] sm:$0xff]  ;;  %v279_v54 = vld [vmem:[%s1062_s26 + $0x370] sm:$0xff]  ;;  %v204_v56 = vld [vmem:[%s1062_s26 + $0x118] sm:$0xff] }
  0x4e   : > { %762 = vmatpush1.bf16.msra.mxu0 %v761_v63  ;;  %690 = vmatpush1.bf16.msra.mxu1 %v689_v23  ;;  %v282_v57 = vld [vmem:[%s1062_s26 + $0x388] sm:$0xff]  ;;  %v284_v58 = vld [vmem:[%s1062_s26 + $0x398] sm:$0xff]  ;;  %v701_v59 = vpack.c.bf16 %v199_v52, %v197_v51  ;;  %v781_v60 = vpack.c.bf16 %v279_v54, %v277_v49  ;;  %v281_v61 = vld [vmem:[%s1062_s26 + $0x380] sm:$0xff]  ;;  %v703_v62 = vpack.c.bf16 %v204_v56, %v202_v55 }
  0x4f   : > { %764 = vmatprep.subr.bf16.mxu0 %v763_v4  ;;  %692 = vmatprep.subr.bf16.mxu1 %v691_v26  ;;  %v201_v63 = vld [vmem:[%s1062_s26 + $0x100] sm:$0xff]  ;;  %v203_v0 = vld [vmem:[%s1062_s26 + $0x110] sm:$0xff]  ;;  %v783_v1 = vpack.c.bf16 %v284_v58, %v282_v57  ;;  %v206_v3 = vld [vmem:[%s1062_s26 + $0x128] sm:$0xff] }
  0x50   : > { %v283_v2 = vld [vmem:[%s1062_s26 + $0x390] sm:$0xff]  ;;  %v208_v4 = vld [vmem:[%s1062_s26 + $0x138] sm:$0xff]  ;;  %v286_v5 = vld [vmem:[%s1062_s26 + $0x3a8] sm:$0xff]  ;;  %v705_v7 = vpack.c.bf16 %v203_v0, %v201_v63 }
  0x51   : > { %v288_v6 = vld [vmem:[%s1062_s26 + $0x3b8] sm:$0xff]  ;;  %v785_v8 = vpack.c.bf16 %v283_v2, %v281_v61  ;;  %v285_v9 = vld [vmem:[%s1062_s26 + $0x3a0] sm:$0xff]  ;;  %v707_v10 = vpack.c.bf16 %v208_v4, %v206_v3  ;;  %v287_v14 = vld [vmem:[%s1062_s26 + $0x3b0] sm:$0xff] }
  0x52   : > { %766 = vmatpush1.bf16.msra.mxu0 %v765_v12  ;;  %694 = vmatpush1.bf16.msra.mxu1 %v693_v35  ;;  %v205_v11 = vld [vmem:[%s1062_s26 + $0x120] sm:$0xff]  ;;  %v207_v12 = vld [vmem:[%s1062_s26 + $0x130] sm:$0xff]  ;;  %v787_v13 = vpack.c.bf16 %v288_v6, %v286_v5  ;;  %v210_v15 = vld [vmem:[%s1062_s26 + $0x148] sm:$0xff]  ;;  %v789_v20 = vpack.c.bf16 %v287_v14, %v285_v9 }
  0x53   : > { %768 = vmatprep.subr.bf16.mxu0 %v767_v17  ;;  %696 = vmatprep.subr.bf16.mxu1 %v695_v38  ;;  %v212_v16 = vld [vmem:[%s1062_s26 + $0x158] sm:$0xff]  ;;  %v290_v17 = vld [vmem:[%s1062_s26 + $0x3c8] sm:$0xff]  ;;  %v709_v19 = vpack.c.bf16 %v207_v12, %v205_v11  ;;  %v289_v21 = vld [vmem:[%s1062_s26 + $0x3c0] sm:$0xff] }
  0x54   : > { %v292_v18 = vld [vmem:[%s1062_s26 + $0x3d8] sm:$0xff]  ;;  %v711_v22 = vpack.c.bf16 %v212_v16, %v210_v15  ;;  %v209_v23 = vld [vmem:[%s1062_s26 + $0x140] sm:$0xff]  ;;  %v291_v26 = vld [vmem:[%s1062_s26 + $0x3d0] sm:$0xff] }
  0x55   : > { %v791_v25 = vpack.c.bf16 %v292_v18, %v290_v17  ;;  %v214_v27 = vld [vmem:[%s1062_s26 + $0x168] sm:$0xff]  ;;  %v216_v28 = vld [vmem:[%s1062_s26 + $0x178] sm:$0xff]  ;;  %v793_v32 = vpack.c.bf16 %v291_v26, %v289_v21  ;;  %v293_v33 = vld [vmem:[%s1062_s26 + $0x3e0] sm:$0xff] }
  0x56   : > { %770 = vmatpush1.bf16.msra.mxu0 %v769_v24  ;;  %698 = vmatpush1.bf16.msra.mxu1 %v697_v47  ;;  %v211_v24 = vld [vmem:[%s1062_s26 + $0x150] sm:$0xff]  ;;  %v296_v30 = vld [vmem:[%s1062_s26 + $0x3f8] sm:$0xff]  ;;  %v715_v34 = vpack.c.bf16 %v216_v28, %v214_v27  ;;  %v213_v35 = vld [vmem:[%s1062_s26 + $0x160] sm:$0xff] }
  0x57   : > { %772 = vmatprep.subr.bf16.mxu0 %v771_v29  ;;  %700 = vmatprep.subr.bf16.mxu1 %v699_v50  ;;  %v294_v29 = vld [vmem:[%s1062_s26 + $0x3e8] sm:$0xff]  ;;  %v713_v31 = vpack.c.bf16 %v211_v24, %v209_v23  ;;  %v295_v38 = vld [vmem:[%s1062_s26 + $0x3f0] sm:$0xff]  ;;  %v220_v40 = vld [vmem:[%s1062_s26 + $0x198] sm:$0xff] }
  0x58   : > { %v795_v37 = vpack.c.bf16 %v296_v30, %v294_v29  ;;  %v218_v39 = vld [vmem:[%s1062_s26 + $0x188] sm:$0xff]  ;;  %v300_v42 = vld [vmem:[%s1062_s26 + $0x418] sm:$0xff]  ;;  %v797_v45 = vpack.c.bf16 %v295_v38, %v293_v33  ;;  %v297_v46 = vld [vmem:[%s1062_s26 + $0x400] sm:$0xff] }
  0x59   : > { %v164_v43 = vld [vmem:[%s1277_s0 + $0x8] sm:$0xff]  ;;  %v719_v47 = vpack.c.bf16 %v220_v40, %v218_v39  ;;  %v219_v49 = vld [vmem:[%s1062_s26 + $0x190] sm:$0xff]  ;;  %v304_v55 = vld [vmem:[%s1062_s26 + $0x438] sm:$0xff] }
  0x5a   : > { %774 = vmatpush1.bf16.msra.mxu0 %v773_v36  ;;  %702 = vmatpush1.bf16.msra.mxu1 %v701_v59  ;;  %v215_v36 = vld [vmem:[%s1062_s26 + $0x170] sm:$0xff]  ;;  %v222_v52 = vld [vmem:[%s1062_s26 + $0x1a8] sm:$0xff]  ;;  %v301_v59 = vld [vmem:[%s1062_s26 + $0x420] sm:$0xff] }
  0x5b   : > { %776 = vmatprep.subr.bf16.mxu0 %v775_v41  ;;  %704 = vmatprep.subr.bf16.mxu1 %v703_v62  ;;  %v298_v41 = vld [vmem:[%s1062_s26 + $0x408] sm:$0xff]  ;;  %v717_v44 = vpack.c.bf16 %v215_v36, %v213_v35  ;;  %v299_v51 = vld [vmem:[%s1062_s26 + $0x410] sm:$0xff]  ;;  %v221_v61 = vld [vmem:[%s1062_s26 + $0x1a0] sm:$0xff] }
  0x5c   : > { %409 = vmatprep.mubr.f32.mxu1 %v164_v43  ;;  %v799_v50 = vpack.c.bf16 %v300_v42, %v298_v41  ;;  %v302_v54 = vld [vmem:[%s1062_s26 + $0x428] sm:$0xff]  ;;  %v165_v56 = vld [vmem:[%s1277_s0 + $0x10] sm:$0xff]  ;;  %v801_v58 = vpack.c.bf16 %v299_v51, %v297_v46  ;;  %v228_v2 = vld [vmem:[%s1062_s26 + $0x1d8] sm:$0xff] }
  0x5d   : > { %v223_v62 = vld [vmem:[%s1062_s26 + $0x1b0] sm:$0xff]  ;;  %v803_v63 = vpack.c.bf16 %v304_v55, %v302_v54  ;;  %v306_v3 = vld [vmem:[%s1062_s26 + $0x448] sm:$0xff]  ;;  %v308_v4 = vld [vmem:[%s1062_s26 + $0x458] sm:$0xff] }
  0x5e   : > { %778 = vmatpush1.bf16.msra.mxu0 %v777_v48  ;;  %706 = vmatpush1.bf16.msra.mxu1 %v705_v7  ;;  %v217_v48 = vld [vmem:[%s1062_s26 + $0x180] sm:$0xff]  ;;  %v303_v0 = vld [vmem:[%s1062_s26 + $0x430] sm:$0xff]  ;;  %v168_v5 = vld [vmem:[%s1277_s0 + $0x28] sm:$0xff]  ;;  %v725_v6 = vpack.c.bf16 %v223_v62, %v221_v61  ;;  %v807_v12 = vpack.c.bf16 %v308_v4, %v306_v3 }
  0x5f   : > { %780 = vmatprep.subr.bf16.mxu0 %v779_v53  ;;  %708 = vmatprep.subr.bf16.mxu1 %v707_v10  ;;  %v224_v53 = vld [vmem:[%s1062_s26 + $0x1b8] sm:$0xff]  ;;  %v721_v57 = vpack.c.bf16 %v219_v49, %v217_v48  ;;  %v805_v7 = vpack.c.bf16 %v303_v0, %v301_v59  ;;  %v225_v10 = vld [vmem:[%s1062_s26 + $0x1c0] sm:$0xff]  ;;  %v227_v11 = vld [vmem:[%s1062_s26 + $0x1d0] sm:$0xff] }
  0x60   : > { %v230_v14 = vld [vmem:[%s1062_s26 + $0x1e8] sm:$0xff]  ;;  %v232_v15 = vld [vmem:[%s1062_s26 + $0x1f8] sm:$0xff]  ;;  %v729_v18 = vpack.c.bf16 %v227_v11, %v225_v10  ;;  %v229_v21 = vld [vmem:[%s1062_s26 + $0x1e0] sm:$0xff] }
  0x61   : > { %v310_v16 = vld [vmem:[%s1062_s26 + $0x468] sm:$0xff]  ;;  %v312_v17 = vld [vmem:[%s1062_s26 + $0x478] sm:$0xff]  ;;  %v309_v24 = vld [vmem:[%s1062_s26 + $0x460] sm:$0xff] }
  0x62   : > { %782 = vmatpush1.bf16.msra.mxu0 %v781_v60  ;;  %710 = vmatpush1.bf16.msra.mxu1 %v709_v19  ;;  %v723_v60 = vpack.c.bf16 %v224_v53, %v222_v52  ;;  %v811_v23 = vpack.c.bf16 %v312_v17, %v310_v16  ;;  %v314_v26 = vld [vmem:[%s1062_s26 + $0x488] sm:$0xff]  ;;  %v316_v27 = vld [vmem:[%s1062_s26 + $0x498] sm:$0xff]  ;;  %v163_v35 = vld [vmem:[%s1277_s0] sm:$0xff] }
  0x63   : > { %784 = vmatprep.subr.bf16.mxu0 %v783_v1  ;;  %712 = vmatprep.subr.bf16.mxu1 %v711_v22  ;;  %v226_v1 = vld [vmem:[%s1062_s26 + $0x1c8] sm:$0xff]  ;;  %v231_v22 = vld [vmem:[%s1062_s26 + $0x1f0] sm:$0xff]  ;;  %v815_v30 = vpack.c.bf16 %v316_v27, %v314_v26  ;;  %v317_v38 = vld [vmem:[%s1062_s26 + $0x4a0] sm:$0xff] }
  0x64   : > { %v727_v9 = vpack.c.bf16 %v228_v2, %v226_v1  ;;  %v733_v28 = vpack.c.bf16 %v231_v22, %v229_v21  ;;  %v318_v33 = vld [vmem:[%s1062_s26 + $0x4a8] sm:$0xff]  ;;  %v319_v39 = vld [vmem:[%s1062_s26 + $0x4b0] sm:$0xff]  ;;  %v324_v41 = vld [vmem:[%s1062_s26 + $0x4d8] sm:$0xff]  ;;  %v578_v22 = vlaneseq }
  0x65   : > { %v322_v40 = vld [vmem:[%s1062_s26 + $0x4c8] sm:$0xff]  ;;  %v821_v42 = vpack.c.bf16 %v319_v39, %v317_v38  ;;  %v327_v51 = vld [vmem:[%s1062_s26 + $0x4f0] sm:$0xff]  ;;  %v332_v53 = vld [vmem:[%s1062_s26 + $0x518] sm:$0xff] }
  0x66   : > { %786 = vmatpush1.bf16.msra.mxu0 %v785_v8  ;;  %714 = vmatpush1.bf16.msra.mxu1 %v713_v31  ;;  %v305_v8 = vld [vmem:[%s1062_s26 + $0x440] sm:$0xff]  ;;  %v823_v43 = vpack.c.bf16 %v324_v41, %v322_v40  ;;  %v326_v46 = vld [vmem:[%s1062_s26 + $0x4e8] sm:$0xff]  ;;  %v336_v59 = vld [vmem:[%s1062_s26 + $0x538] sm:$0xff]  ;;  %vm592_vm1 = vcmp.lt.s32.totalorder %v578_v22, 256 }
  0x67   : > { %788 = vmatprep.subr.bf16.mxu0 %v787_v13  ;;  %716 = vmatprep.subr.bf16.mxu1 %v715_v34  ;;  %v307_v13 = vld [vmem:[%s1062_s26 + $0x450] sm:$0xff]  ;;  %v313_v31 = vld [vmem:[%s1062_s26 + $0x480] sm:$0xff]  ;;  %v320_v34 = vld [vmem:[%s1062_s26 + $0x4b8] sm:$0xff] }
  0x68   : > { %v809_v19 = vpack.c.bf16 %v307_v13, %v305_v8  ;;  %v330_v52 = vld [vmem:[%s1062_s26 + $0x508] sm:$0xff]  ;;  %v333_v62 = vld [vmem:[%s1062_s26 + $0x520] sm:$0xff]  ;;  %v340_v1 = vld [vmem:[%s1062_s26 + $0x558] sm:$0xff] }
  0x69   : > { %v831_v55 = vpack.c.bf16 %v332_v53, %v330_v52  ;;  %v338_v0 = vld [vmem:[%s1062_s26 + $0x548] sm:$0xff]  ;;  %v337_v4 = vld [vmem:[%s1062_s26 + $0x540] sm:$0xff] }
  0x6a   : > { %790 = vmatpush1.bf16.msra.mxu0 %v789_v20  ;;  %718 = vmatpush1.bf16.msra.mxu1 %v717_v44  ;;  %v731_v20 = vpack.c.bf16 %v232_v15, %v230_v14  ;;  %v321_v44 = vld [vmem:[%s1062_s26 + $0x4c0] sm:$0xff]  ;;  %v839_v3 = vpack.c.bf16 %v340_v1, %v338_v0 }
  0x6b   : > { %792 = vmatprep.subr.bf16.mxu0 %v791_v25  ;;  %720 = vmatprep.subr.bf16.mxu1 %v719_v47  ;;  %v311_v25 = vld [vmem:[%s1062_s26 + $0x470] sm:$0xff]  ;;  %v328_v47 = vld [vmem:[%s1062_s26 + $0x4f8] sm:$0xff] }
  0x6c   : > { %v813_v29 = vpack.c.bf16 %v311_v25, %v309_v24  ;;  %v827_v49 = vpack.c.bf16 %v328_v47, %v326_v46 }
  0x6e   : > { %794 = vmatpush1.bf16.msra.mxu0 %v793_v32  ;;  %722 = vmatpush1.bf16.msra.mxu1 %v721_v57  ;;  %v315_v32 = vld [vmem:[%s1062_s26 + $0x490] sm:$0xff] }
  0x6f   : > { %796 = vmatprep.subr.bf16.mxu0 %v795_v37  ;;  %724 = vmatprep.subr.bf16.mxu1 %v723_v60  ;;  %v817_v36 = vpack.c.bf16 %v315_v32, %v313_v31  ;;  %v819_v37 = vpack.c.bf16 %v320_v34, %v318_v33  ;;  %v331_v57 = vld [vmem:[%s1062_s26 + $0x510] sm:$0xff] }
  0x72   : > { %798 = vmatpush1.bf16.msra.mxu0 %v797_v45  ;;  %726 = vmatpush1.bf16.msra.mxu1 %v725_v6  ;;  %v323_v45 = vld [vmem:[%s1062_s26 + $0x4d0] sm:$0xff] }
  0x73   : > { %800 = vmatprep.subr.bf16.mxu0 %v799_v50  ;;  %728 = vmatprep.subr.bf16.mxu1 %v727_v9  ;;  %v825_v48 = vpack.c.bf16 %v323_v45, %v321_v44  ;;  %v325_v50 = vld [vmem:[%s1062_s26 + $0x4e0] sm:$0xff] }
  0x74   : > { %v829_v54 = vpack.c.bf16 %v327_v51, %v325_v50 }
  0x75   : > { %481 = vmatmul.mubr.f32.vlgmr.msra.gmra.mrb[0].mxu0 %v165_v56  ;;  %v329_v56 = vld [vmem:[%s1062_s26 + $0x500] sm:$0xff] }
  0x76   : > { %802 = vmatpush1.bf16.msra.mxu0 %v801_v58  ;;  %667 = vmatprep.mubr.msk.f32.mxu0 %vm341_vm0, %v168_v5  ;;  %v334_v58 = vld [vmem:[%s1062_s26 + $0x528] sm:$0xff]  ;;  %v833_v60 = vpack.c.bf16 %v331_v57, %v329_v56  ;;  %v339_v5 = vld [vmem:[%s1062_s26 + $0x550] sm:$0xff] }
  0x77   : > { %804 = vmatprep.subr.bf16.mxu0 %v803_v63  ;;  %730 = vmatpush1.bf16.msra.mxu1 %v729_v18  ;;  %v835_v61 = vpack.c.bf16 %v336_v59, %v334_v58  ;;  %v335_v63 = vld [vmem:[%s1062_s26 + $0x530] sm:$0xff]  ;;  %v841_v6 = vpack.c.bf16 %v339_v5, %v337_v4 }
  0x78   : > { %732 = vmatprep.subr.bf16.mxu1 %v731_v20  ;;  %v837_v2 = vpack.c.bf16 %v335_v63, %v333_v62  ;;  %v962_v20 = vmov 1966171168  }
  0x79   : > { %v576_v21 = vunpack.c.l.s4 %v962_v20 }
  0x7a   : > { %806 = vmatpush1.bf16.msra.mxu0 %v805_v7  ;;  %v167_v7 = vld [vmem:[%s1277_s0 + $0x20] sm:$0xff] }
  0x7b   : > { %808 = vmatprep.subr.bf16.mxu0 %v807_v12  ;;  %734 = vmatpush1.bf16.msra.mxu1 %v733_v28  ;;  %v577_v27 = vunpack.c.0.s8 %v576_v21  ;;  %v579_v28 = vshrl.u32 %v578_v22, 7 }
  0x7d   : > { %v580_v33 = vsub.s32 %v577_v27, %v579_v28 }
  0x7e   : > { %810 = vmatpush1.bf16.msra.mxu0 %v809_v19  ;;  %410 = vmatmul.mubr.f32.vlgmr.msra.gmra.mrb[0].mxu1 %v163_v35 }
  0x7f   : > { %812 = vmatprep.subr.bf16.mxu0 %v811_v23 }
  0x82   : > { %814 = vmatpush1.bf16.msra.mxu0 %v813_v29 }
  0x83   : > { %816 = vmatprep.subr.bf16.mxu0 %v815_v30 }
  0x86   : > { %818 = vmatpush1.bf16.msra.mxu0 %v817_v36 }
  0x87   : > { %820 = vmatprep.subr.bf16.mxu0 %v819_v37 }
  0x8a   : > { %822 = vmatpush1.bf16.msra.mxu0 %v821_v42 }
  0x8b   : > { %824 = vmatprep.subr.bf16.mxu0 %v823_v43 }
  0x8e   : > { %826 = vmatpush1.bf16.msra.mxu0 %v825_v48 }
  0x8f   : > { %828 = vmatprep.subr.bf16.mxu0 %v827_v49 }
  0x92   : > { %830 = vmatpush1.bf16.msra.mxu0 %v829_v54 }
  0x93   : > { %832 = vmatprep.subr.bf16.mxu0 %v831_v55 }
  0x96   : > { %834 = vmatpush1.bf16.msra.mxu0 %v833_v60 }
  0x97   : > { %836 = vmatprep.subr.bf16.mxu0 %v835_v61 }
  0x9a   : > { %838 = vmatpush1.bf16.msra.mxu0 %v837_v2 }
  0x9b   : > { %840 = vmatprep.subr.bf16.mxu0 %v839_v3 }
  0x9e   : > { %842 = vmatpush1.bf16.msra.mxu0 %v841_v6 }
  0xa1   : > { %552 = vmatmul.mubr.f32.vlgmr.msra.gmra.mrb[0].mxu0 %v167_v7 }
 0x151   : > { %v411_v8 = vpop.f32.mrb[0].mxu1 }
 0x152   : > { %v413_v9 = vpop.f32.mrb[1].mxu1 }
 0x174   : > { %v553_v10 = vpop.f32.mrb[0].mxu0 }
 0x175   : > { %v843_v11 = vadd.f32 %v553_v10, %v411_v8  ;;  %v555_v12 = vpop.f32.mrb[1].mxu0 }
 0x176   : > { %v844_v13 = vadd.f32 %v555_v12, %v413_v9 }
 0x177   : > { %v558_v14 = vmul.f32 %v843_v11, %v843_v11 }
 0x178   : > { %v559_v15 = vmul.f32 %v844_v13, %v844_v13 }
 0x179   : > { %v560_v16 = vrot.slane %v558_v14, 4 }
 0x17a   : > { %v566_v17 = vrot.slane %v559_v15, 4 }
 0x17b   : > { %v561_v18 = vadd.f32 %v560_v16, %v558_v14 }
 0x17c   : > { %v567_v19 = vadd.f32 %v566_v17, %v559_v15 }
 0x17d   : > { %v562_v23 = vrot.slane %v561_v18, 2 }
 0x17e   : > { %v568_v24 = vrot.slane %v567_v19, 2 }
 0x17f   : > { %v563_v25 = vadd.f32 %v562_v23, %v561_v18 }
 0x180   : > { %v569_v26 = vadd.f32 %v568_v24, %v567_v19 }
 0x181   : > { %v564_v29 = vrot.slane %v563_v25, 1 }
 0x182   : > { %v570_v30 = vrot.slane %v569_v26, 1 }
 0x183   : > { %v565_v31 = vadd.f32 %v564_v29, %v563_v25 }
 0x184   : > { %v571_v32 = vadd.f32 %v570_v30, %v569_v26 }
 0x186   : > { %v574_v34 = vcombine.low %v565_v31, %v571_v32 }
 0x188   : > { %v581_v35 = vrot.slane %v574_v34, %v580_v33 }
 0x18a   : > { %v588_v36 = vrot.slane %v581_v35, %v580_v33 }
 0x18c   : > { %594 = vst.msk [vmem:[%s162_s15] sm:$0x3] %vm592_vm1, %v588_v36 }
 0x18d PF: > { %p12_p8 = scmp.ge.s32.totalorder %s1000_s14, 6   ;;  %s1282_s9 = smov %s948_s10 }
 0x18e   : > { %s1283_s10 = smov %s952_s11  ;;  %s1284_s11 = smov %s1010_s17 }
 0x18f   : > { %s1285_s12 = smov %s1000_s14  ;;  %14 = sbr.rel (!%p12_p8) target bundleno = 3 (0x3), region = 68 }
 0x196   :  { %614 = vsyncpa [#allocation3], 1 }
 0x197   :  { %616 = vsyncpa [#allocation3 + $0x1], 1 }

</bundles_post_ra>
